<compile_context>
chip_gen: v7x
topology: tpu7x:2x2x1
jax: 0.10.0
libtpu: 0.0.40
codegen_flags: <defaults>
</compile_context>

<pallas_src>
import functools

import jax
import jax.numpy as jnp
import numpy as np
from jax.experimental import pallas as pl
from jax.experimental.pallas import tpu as pltpu  # noqa: F401  (TPU backend)


def _conv1d_kernel(x_ref, w_ref, o_ref, *, K, dilation, padding, L_out, relu):
    """Single invocation (no grid); everything resident in VMEM.

    x_ref : (B, C_in, T)          unpadded input
    w_ref : (C_out, C_in*K + 1)   weight-normed weight, k-major columns,
                                  last column = bias
    o_ref : (C_out, B*L_out)      lane-dense output (batch folded onto lanes)
    """
    B, C_in, T = x_ref.shape
    x = x_ref[...].astype(jnp.float32)

    # im2col: rhs[k*C_in + c, b*L_out + t] = x_padded[b, c, t + k*dilation]
    # built from static slices + zero halos (left-only in the causal case).
    row_blocks = []
    for k in range(K):
        s = k * dilation - padding          # start index into *unpadded* x
        cols = []
        for b in range(B):
            lo, hi = max(0, s), min(T, s + L_out)
            parts = []
            if lo > s:
                parts.append(jnp.zeros((C_in, lo - s), jnp.float32))
            if hi > lo:
                parts.append(x[b, :, lo:hi])
            if s + L_out > hi:
                parts.append(jnp.zeros((C_in, s + L_out - hi), jnp.float32))
            cols.append(parts[0] if len(parts) == 1
                        else jnp.concatenate(parts, axis=-1))
        row_blocks.append(cols[0] if B == 1
                          else jnp.concatenate(cols, axis=-1))  # (C_in, B*L_out)

    rhs = jnp.concatenate(
        row_blocks + [jnp.ones((1, B * L_out), jnp.float32)],   # bias row
        axis=0)                                                 # (C_in*K+1, B*L_out)

    # One MXU call covers all K taps, all batches, and the bias add.
    y = jnp.dot(w_ref[...], rhs, preferred_element_type=jnp.float32)
    if relu:
        y = jnp.maximum(y, 0.0)
    o_ref[...] = y.astype(o_ref.dtype)


@functools.partial(jax.jit, static_argnames=("kernel_size", "dilation",
                                             "causal", "nonlinearity"))
def conv1d_c_forward(x, weight_v, weight_g, bias, *, kernel_size, dilation,
                     causal, nonlinearity):
    """Forward pass of module C (eval mode).

    x        : (B, C_in, T)
    weight_v : (C_out, C_in, K)   weight_norm `v`
    weight_g : (C_out, 1, 1)      weight_norm `g`
    bias     : (C_out,)
    returns  : (B, C_out, L_out)  (L_out == T in the causal case)
    """
    B, C_in, T = x.shape
    C_out = weight_v.shape[0]
    K = kernel_size

    if causal:
        padding = (K - 1) * dilation
    else:
        padding = (K - 1) * dilation // 2
    L_conv = T + 2 * padding - dilation * (K - 1)      # nn.Conv1d output length
    L_out = L_conv - padding if (causal and padding > 0) else L_conv

    # Weight norm (per-output-channel L2 over (C_in, K)), k-major flatten and
    # appended bias column -- a few tiny ops fused by jit into one prologue.
    v = weight_v.astype(jnp.float32)
    g = weight_g.astype(jnp.float32).reshape(C_out, 1, 1)
    w = v * (g * jax.lax.rsqrt(jnp.sum(v * v, axis=(1, 2), keepdims=True)))
    w2d = jnp.transpose(w, (0, 2, 1)).reshape(C_out, K * C_in)      # k-major cols
    w_aug = jnp.concatenate(
        [w2d, bias.astype(jnp.float32).reshape(C_out, 1)], axis=1)  # (C_out, K*C_in+1)

    kernel = functools.partial(_conv1d_kernel, K=K, dilation=dilation,
                               padding=padding, L_out=L_out,
                               relu=(nonlinearity == 'relu'))
    y_flat = pl.pallas_call(
        kernel,
        out_shape=jax.ShapeDtypeStruct((C_out, B * L_out), jnp.float32),
    )(x, w_aug)

    # Layout plumbing back to the module's (B, C_out, L_out) -- fused by jit.
    y = jnp.transpose(y_flat.reshape(C_out, B, L_out), (1, 0, 2))
    return y.astype(x.dtype)


if __name__ == "__main__":
    # Small, deterministic setup consistent with the module's __init__.
    B, C_in, C_out, T = 2, 4, 8, 16
    K, dilation = 3, 2
    causal = True
    nonlinearity = 'relu'

    key = jax.random.PRNGKey(0)
    k1, k2, k3 = jax.random.split(key, 3)
    x = jax.random.normal(k1, (B, C_in, T), dtype=jnp.float32)
    weight_v = jax.random.normal(k2, (C_out, C_in, K), dtype=jnp.float32) * 0.3
    # weight_norm init: g = ||v|| per output channel (effective weight == v).
    weight_g = jnp.sqrt(jnp.sum(weight_v ** 2, axis=(1, 2), keepdims=True))
    bias = jax.random.normal(k3, (C_out,), dtype=jnp.float32) * 0.1

    y = conv1d_c_forward(x, weight_v, weight_g, bias,
                         kernel_size=K, dilation=dilation,
                         causal=causal, nonlinearity=nonlinearity)
    jax.block_until_ready(y)
    assert y.shape == (B, C_out, T), y.shape

    # Pure-JAX reference (same eval-mode semantics) for a sanity check.
    w_eff = weight_g * weight_v / jnp.sqrt(
        jnp.sum(weight_v ** 2, axis=(1, 2), keepdims=True))
    pad = (K - 1) * dilation
    x_pad = jnp.pad(x, ((0, 0), (0, 0), (pad, 0)))
    y_ref = jnp.zeros((B, C_out, T), jnp.float32)
    for k in range(K):
        y_ref = y_ref + jnp.einsum(
            'oc,bct->bot', w_eff[:, :, k],
            x_pad[:, :, k * dilation:k * dilation + T],
            precision=jax.lax.Precision.HIGHEST)
    y_ref = jnp.maximum(y_ref + bias.reshape(1, C_out, 1), 0.0)
    np.testing.assert_allclose(np.asarray(y), np.asarray(y_ref),
                               rtol=5e-2, atol=5e-2)

    print("KERNEL_OK")
</pallas_src>

<mosaic_0001>
module attributes {stable_mosaic.version = 11 : i64} {
  func.func @_conv1d_kernel(%arg0: memref<2x4x16xf32, #tpu.memory_space<vmem>>, %arg1: memref<8x13xf32, #tpu.memory_space<vmem>>, %arg2: memref<8x32xf32, #tpu.memory_space<vmem>>) attributes {dimension_semantics = [], scalar_prefetch = 0 : i64, scratch_operands = 0 : i64, tpu.core_type = #tpu.core_type<tc>} {
    %c0 = arith.constant 0 : index
    %c0_0 = arith.constant 0 : index
    %c0_1 = arith.constant 0 : index
    %0 = vector.load %arg0[%c0, %c0_0, %c0_1] : memref<2x4x16xf32, #tpu.memory_space<vmem>>, vector<2x4x16xf32>
    %cst = arith.constant 0.000000e+00 : f32
    %1 = vector.broadcast %cst : f32 to vector<4x4xf32>
    %2 = vector.extract_strided_slice %0 {offsets = [0, 0, 0], sizes = [1, 4, 12], strides = [1, 1, 1]} : vector<2x4x16xf32> to vector<1x4x12xf32>
    %3 = vector.shape_cast %2 : vector<1x4x12xf32> to vector<4x12xf32>
    %4 = tpu.concatenate %1, %3 in 1 : vector<4x4xf32>, vector<4x12xf32> -> vector<4x16xf32>
    %cst_2 = arith.constant 0.000000e+00 : f32
    %5 = vector.broadcast %cst_2 : f32 to vector<4x4xf32>
    %6 = vector.extract_strided_slice %0 {offsets = [1, 0, 0], sizes = [1, 4, 12], strides = [1, 1, 1]} : vector<2x4x16xf32> to vector<1x4x12xf32>
    %7 = vector.shape_cast %6 : vector<1x4x12xf32> to vector<4x12xf32>
    %8 = tpu.concatenate %5, %7 in 1 : vector<4x4xf32>, vector<4x12xf32> -> vector<4x16xf32>
    %9 = tpu.concatenate %4, %8 in 1 : vector<4x16xf32>, vector<4x16xf32> -> vector<4x32xf32>
    %cst_3 = arith.constant 0.000000e+00 : f32
    %10 = vector.broadcast %cst_3 : f32 to vector<4x2xf32>
    %11 = vector.extract_strided_slice %0 {offsets = [0, 0, 0], sizes = [1, 4, 14], strides = [1, 1, 1]} : vector<2x4x16xf32> to vector<1x4x14xf32>
    %12 = vector.shape_cast %11 : vector<1x4x14xf32> to vector<4x14xf32>
    %13 = tpu.concatenate %10, %12 in 1 : vector<4x2xf32>, vector<4x14xf32> -> vector<4x16xf32>
    %cst_4 = arith.constant 0.000000e+00 : f32
    %14 = vector.broadcast %cst_4 : f32 to vector<4x2xf32>
    %15 = vector.extract_strided_slice %0 {offsets = [1, 0, 0], sizes = [1, 4, 14], strides = [1, 1, 1]} : vector<2x4x16xf32> to vector<1x4x14xf32>
    %16 = vector.shape_cast %15 : vector<1x4x14xf32> to vector<4x14xf32>
    %17 = tpu.concatenate %14, %16 in 1 : vector<4x2xf32>, vector<4x14xf32> -> vector<4x16xf32>
    %18 = tpu.concatenate %13, %17 in 1 : vector<4x16xf32>, vector<4x16xf32> -> vector<4x32xf32>
    %19 = vector.extract_strided_slice %0 {offsets = [0, 0, 0], sizes = [1, 4, 16], strides = [1, 1, 1]} : vector<2x4x16xf32> to vector<1x4x16xf32>
    %20 = vector.shape_cast %19 : vector<1x4x16xf32> to vector<4x16xf32>
    %21 = vector.extract_strided_slice %0 {offsets = [1, 0, 0], sizes = [1, 4, 16], strides = [1, 1, 1]} : vector<2x4x16xf32> to vector<1x4x16xf32>
    %22 = vector.shape_cast %21 : vector<1x4x16xf32> to vector<4x16xf32>
    %23 = tpu.concatenate %20, %22 in 1 : vector<4x16xf32>, vector<4x16xf32> -> vector<4x32xf32>
    %cst_5 = arith.constant 1.000000e+00 : f32
    %24 = vector.broadcast %cst_5 : f32 to vector<1x32xf32>
    %25 = tpu.concatenate %9, %18, %23, %24 in 0 : vector<4x32xf32>, vector<4x32xf32>, vector<4x32xf32>, vector<1x32xf32> -> vector<13x32xf32>
    %c0_6 = arith.constant 0 : index
    %c0_7 = arith.constant 0 : index
    %26 = vector.load %arg1[%c0_6, %c0_7] : memref<8x13xf32, #tpu.memory_space<vmem>>, vector<8x13xf32>
    %cst_8 = arith.constant dense<0.000000e+00> : vector<8x32xf32>
    %27 = tpu.matmul %26, %25, %cst_8 {dimension_numbers = #tpu.dot_dimension_numbers<[1], [0], [0], [1], [0, 0, 1, 1], [], []>} : vector<8x13xf32>, vector<13x32xf32>, vector<8x32xf32> -> vector<8x32xf32>
    %cst_9 = arith.constant 0.000000e+00 : f32
    %28 = vector.broadcast %cst_9 : f32 to vector<8x32xf32>
    %29 = arith.maximumf %27, %28 : vector<8x32xf32>
    %c0_10 = arith.constant 0 : index
    %c0_11 = arith.constant 0 : index
    %30 = vector.load %arg2[%c0_10, %c0_11] : memref<8x32xf32, #tpu.memory_space<vmem>>, vector<8x32xf32>
    tpu.vector_store %arg2[%c0_10, %c0_11], %29 {strides = array<i32>} : memref<8x32xf32, #tpu.memory_space<vmem>>, vector<8x32xf32>,
    return
  }
}

</mosaic_0001>

<bundles_post_ra>
// kernel: conv1d_c_forward.1
= control target key start
LH: loop header
LB: loop body
LE: loop exit
PB: predicated region body
PF: predicated region fallthrough
CT: control target
= control target key end

     0   :  { %s168_s13 = smov 2   ;;  %s169_s14 = smov 4   ;;  %vm33_vm0 = vcmask 15360   ;;  %vm17_vm1 = vcmask 31744   ;;  %v170_v3 = vmov 0.0|0.0   ;;  %vm171_vm2 = vmmov 0   ;;  %s206_s0 = inlined_call_operand.vmem [shape: f32[2,4,16], index: 0, kind: input, shape index: {}]   ;;  %s207_s1 = inlined_call_operand.vmem [shape: f32[8,13], index: 1, kind: input, shape index: {}]   ;;  %s208_s2 = inlined_call_operand.vmem [shape: f32[8,32], index: 2, kind: output, shape index: {}]  }
   0x1   :  { %v12_v0 = vld [vmem:[%s206_s0 + $0x4] sm:$0xf]  ;;  %v11_v1 = vld [vmem:[%s206_s0] sm:$0xf]  ;;  %152 = vmatprep.subr.bf16.mxu0 %v170_v3  ;;  %v172_v5 = vmov 0.0   ;;  %s173_s0 = smov 16  }
   0x2   :  { %35 = vrot.lane.b32.xlu0 %v12_v0, %s168_s13  ;;  %30 = vrot.lane.b32.xlu1 %v11_v1, %s168_s13  ;;  %vm28_vm3 = vcmask 130048   ;;  %vm51_vm4 = vcmask 1043456   ;;  %vm59_vm5 = vcmask 1044480   ;;  %vm174_vm6 = vmmov 1   ;;  %v54_v24 = vld [vmem:[%s207_s1] sm:$0xff] }
   0x3   :  { %149 = vmatprep.mubr.msk.f32.mxu0 %vm171_vm2, %v172_v5  ;;  %vm154_vm7 = vmpackc.low %vm59_vm5, %vm174_vm6  ;;  %vm55_vm8 = vcmask 105472   ;;  %vm134_vm9 = vcmask 261120  }
   0x6   :  { %20 = vrot.lane.b32.xlu0 %v12_v0, %s169_s14 }
   0xa   :  { %14 = vrot.lane.b32.xlu0 %v11_v1, %s169_s14 }
  0x74   :  { %v36_v2 = vpop.permute.xlu0 %35  ;;  %v31_v9 = vpop.permute.xlu1 %30 }
  0x75   :  { %v38_v6 = vsel %vm33_vm0, 0.0, %v36_v2  ;;  %v34_v14 = vsel %vm33_vm0, 0.0, %v31_v9 }
  0x78   :  { %v21_v4 = vpop.permute.xlu0 %20 }
  0x79   :  { %v23_v7 = vsel %vm17_vm1, 0.0, %v21_v4 }
  0x7a   :  { %v163_v8 = vpack.i.bf16 %v23_v7, %v38_v6 }
  0x7c   :  { %164 = vrot.lane.b32.xlu1 %v163_v8, %s173_s0  ;;  %v15_v10 = vpop.permute.xlu0 %14 }
  0x7d   :  { %v18_v15 = vsel %vm17_vm1, 0.0, %v15_v10 }
  0x80   :  { %44 = vrot.lane.b32.xlu1 %v12_v0, %s173_s0 }
  0xee   :  { %v165_v11 = vpop.permute.xlu1 %164 }
  0xef   :  { %v167_v12 = vunpack.i.h.bf16 %v165_v11  ;;  %v166_v13 = vunpack.i.l.bf16 %v165_v11 }
  0xf1   :  { %v43_v16 = vsel %vm28_vm3, %v34_v14, %v166_v13  ;;  %v29_v19 = vsel %vm28_vm3, %v18_v15, %v167_v12 }
  0xf2   :  { %v49_v17 = vrot.slane %v43_v16, 4  ;;  %v45_v18 = vpop.permute.xlu1 %44 }
  0xf3   :  { %v47_v20 = vsel %vm28_vm3, %v11_v1, %v45_v18 }
  0xf4   :  { %v52_v21 = vsel %vm51_vm4, %v29_v19, %v49_v17  ;;  %v53_v22 = vsel %vm51_vm4, %v47_v20, 1.0 }
  0xf5   :  { %v153_v23 = vpack.c.bf16 %v53_v22, %v52_v21 }
  0xf7   :  { %155 = vmatpush3.bf16.msk.msra.mxu0 %vm154_vm7, %v153_v23 }
  0xfa   :  { %150 = vmatmul.mubr.msk.f32.vlgmr.msra.gmra.mrb[0].mxu0 %vm55_vm8, %v54_v24 }
 0x1cd   :  { %v129_v25 = vpop.f32.mrb[0].mxu0 }
 0x1ce   :  { %v133_v26 = vmax.f32 %v129_v25, 0.0  ;;  %v151_v27 = vpop.f32.mrb[1].mxu0 }
 0x1d0   :  { %135 = vst.msk [vmem:[%s208_s2] sm:$0xff] %vm134_vm9, %v133_v26 }

</bundles_post_ra>
